<compile_context>
chip_gen: v5e
topology: v5e:2x2
jax: 0.10.0
libtpu: 0.0.40
codegen_flags: <defaults>
</compile_context>

<pallas_src>
import functools

import jax
import jax.numpy as jnp
from jax.experimental import pallas as pl
from jax.experimental.pallas import tpu as pltpu


def _norm_kernel(x_ref, o_ref, *, inv_strength):
    # Single VPU multiply per vreg; the kernel is purely HBM-bandwidth bound.
    o_ref[...] = x_ref[...] * jnp.asarray(inv_strength, o_ref.dtype)


def simple_norm_layer(x, normalization_strength, *, target_block_bytes=2 * 1024 * 1024):
    """Pallas equivalent of SimpleNormLayer.forward: x / normalization_strength."""
    # TODO(synk): torch true-division promotes integer tensors to float; this
    # kernel assumes floating-point inputs (the only case used in practice).
    orig_shape = x.shape
    dtype = x.dtype
    n = int(x.size)
    inv = 1.0 / float(normalization_strength)

    if n == 0:
        return x

    # ---- Flatten to a lane-dense 2D slab (elementwise op => layout-free). ----
    flat = x.reshape(-1)
    cols = None
    for c in (1024, 512, 256, 128):
        if n % c == 0:
            cols = c
            break

    pad = 0
    if cols is None:
        # Ragged total size: pad only the small 1D tail up to 128 lanes.
        cols = 128
        pad = (-n) % cols
        flat = jnp.pad(flat, (0, pad))

    rows = flat.size // cols
    x2d = flat.reshape(rows, cols)

    # ---- Byte-sized row tiling (multiple of 32 sublanes covers all dtypes). ----
    itemsize = x2d.dtype.itemsize
    max_rows = max(32, target_block_bytes // (cols * itemsize))
    if rows <= max_rows:
        tile_rows = rows                      # single block along rows (full dim ok)
    else:
        tile_rows = max(32, (max_rows // 32) * 32)

    grid = (pl.cdiv(rows, tile_rows),)        # ragged last block handled by Pallas

    kernel = functools.partial(_norm_kernel, inv_strength=inv)

    out2d = pl.pallas_call(
        kernel,
        out_shape=jax.ShapeDtypeStruct((rows, cols), dtype),
        grid_spec=pltpu.PrefetchScalarGridSpec(
            num_scalar_prefetch=0,
            grid=grid,
            in_specs=[pl.BlockSpec((tile_rows, cols), lambda i: (i, 0))],
            out_specs=pl.BlockSpec((tile_rows, cols), lambda i: (i, 0)),
        ),
        compiler_params=pltpu.CompilerParams(
            dimension_semantics=("parallel",),   # megacore-shardable on v7x
        ),
    )(x2d)

    out_flat = out2d.reshape(-1)
    if pad:
        out_flat = out_flat[:n]
    return out_flat.reshape(orig_shape)


if __name__ == "__main__":
    # SimpleNormLayer has no learned parameters; its only "parameter" is the
    # scalar normalization_strength, set deterministically here.
    normalization_strength = 2.5

    key = jax.random.PRNGKey(0)
    x = jax.random.normal(key, (2, 4, 16, 16), dtype=jnp.float32)

    out = simple_norm_layer(x, normalization_strength)
    out = jax.block_until_ready(out)

    ref = x / normalization_strength
    assert out.shape == x.shape and out.dtype == x.dtype
    assert jnp.allclose(out, ref, atol=1e-6, rtol=1e-6)

    # Exercise the ragged-size fallback path (total elements not % 128).
    x2 = jax.random.normal(jax.random.PRNGKey(1), (3, 5, 7), dtype=jnp.float32)
    out2 = jax.block_until_ready(simple_norm_layer(x2, normalization_strength))
    ref2 = x2 / normalization_strength
    assert out2.shape == x2.shape and out2.dtype == x2.dtype
    assert jnp.allclose(out2, ref2, atol=1e-6, rtol=1e-6)

    print("KERNEL_OK")
</pallas_src>

<mosaic_0001>
module attributes {stable_mosaic.version = 11 : i64} {
  func.func @_norm_kernel(%arg0: i32, %arg1: memref<2x1024xf32, #tpu.memory_space<vmem>>, %arg2: memref<2x1024xf32, #tpu.memory_space<vmem>>) attributes {dimension_semantics = [#tpu.dimension_semantics<parallel>], iteration_bounds = array<i64: 1>, scalar_prefetch = 0 : i64, scratch_operands = 0 : i64, tpu.core_type = #tpu.core_type<tc>, window_params = [{transform_indices = @transform_0, window_bounds = array<i64: 2, 1024>}, {transform_indices = @transform_1, window_bounds = array<i64: 2, 1024>}]} {
    %c0 = arith.constant 0 : index
    %c0_0 = arith.constant 0 : index
    %0 = vector.load %arg1[%c0, %c0_0] : memref<2x1024xf32, #tpu.memory_space<vmem>>, vector<2x1024xf32>
    %cst = arith.constant 4.000000e-01 : f32
    %1 = vector.broadcast %cst : f32 to vector<2x1024xf32>
    %2 = arith.mulf %0, %1 : vector<2x1024xf32>
    %c0_1 = arith.constant 0 : index
    %c0_2 = arith.constant 0 : index
    %3 = vector.load %arg2[%c0_1, %c0_2] : memref<2x1024xf32, #tpu.memory_space<vmem>>, vector<2x1024xf32>
    tpu.vector_store %arg2[%c0_1, %c0_2], %2 {strides = array<i32>} : memref<2x1024xf32, #tpu.memory_space<vmem>>, vector<2x1024xf32>,
    return
  }
  func.func @transform_0(%arg0: i32) -> (i32, i32) {
    %c0_i32 = arith.constant 0 : i32
    %c0_i32_0 = arith.constant 0 : i32
    return %arg0, %c0_i32 : i32, i32
  }
  func.func @transform_1(%arg0: i32) -> (i32, i32) {
    %c0_i32 = arith.constant 0 : i32
    %c0_i32_0 = arith.constant 0 : i32
    return %arg0, %c0_i32 : i32, i32
  }
}

</mosaic_0001>

<bundles_post_ra>
// kernel: tpu_custom_call.1
= control target key start
LH: loop header
LB: loop body
LE: loop exit
PB: predicated region body
PF: predicated region fallthrough
CT: control target
= control target key end

     0   :  { %6 = vsyncpa [#allocation3], 0  ;;  %s118_s0 = inlined_call_operand.hbm [shape: f32[2,1024], index: 0, kind: input, shape index: {}]   ;;  %s119_s1 = inlined_call_operand.hbm [shape: f32[2,1024], index: 1, kind: output, shape index: {}]  }
   0x1   :  { %7 = vsyncpa [#allocation4], 0  ;;  %s13_s8 = sshll.u32 %s118_s0, 4  ;;  %s100_s9 = smov [#allocation2]   ;;  %s14_s8 = int_to_ptr.hbm [resolvable:$true] %s13_s8 }
   0x2   :  { %s15_s10 = sshll.u32 %s100_s9, 4  ;;  %s16_s10 = int_to_ptr.vmem [resolvable:$true] %s15_s10 }
   0x3   :  { %18 = dma.hbm_to_vmem [thread:$0]  %s14_s8, 256, %s16_s10, [#allocation3]  }
   0x4   :  { %96 = dma.done.wait [#allocation3], 256  }
   0x5   :  { %97 = vsyncadd [#allocation3], 4294967040  ;;  %s101_s11 = smov [#allocation5]   ;;  %s36_s15 = sshll.u32 %s119_s1, 4  ;;  %v23_v0 = vld [vmem:[#allocation2] sm:$0xff]  ;;  %v24_v1 = vld [vmem:[#allocation2 + $0x8] sm:$0xff]  ;;  %s37_s15 = int_to_ptr.hbm [resolvable:$true] %s36_s15 }
   0x6   :  { %s34_s12 = sshll.u32 %s101_s11, 4  ;;  %v25_v2 = vmul.f32 0.4, %v23_v0  ;;  %v26_v3 = vmul.f32 0.4, %v24_v1  ;;  %s35_s12 = int_to_ptr.vmem [resolvable:$true] %s34_s12 }
   0x8   :  { %27 = vst [vmem:[#allocation5] sm:$0xff] %v25_v2 }
   0x9   :  { %28 = vst [vmem:[#allocation5 + $0x8] sm:$0xff] %v26_v3 }
   0xa   :  { %39 = dma.vmem_to_hbm [thread:$0]  %s35_s12, 256, %s37_s15, [#allocation4]  }
   0xb   :  { %98 = dma.done.wait [#allocation4], 256  }
   0xc   :  { %99 = vsyncadd [#allocation4], 4294967040 }
   0xd   :  { %44 = vsyncpa [#allocation3], 1 }
   0xe   :  { %45 = vsyncpa [#allocation4], 1 }

</bundles_post_ra>
